<compile_context>
chip_gen: v7x
topology: tpu7x:2x2x1
jax: 0.10.0
libtpu: 0.0.40
codegen_flags: <defaults>
</compile_context>

<pallas_src>
import functools

import jax
import jax.numpy as jnp
from jax import lax
from jax.experimental import pallas as pl
from jax.experimental.pallas import tpu as pltpu


# (start, end, weight_index) per column segment, matching the module:
#   shape  [0:100]   -> weights[0]
#   exp    [100:150] -> weights[2]
#   pose   [150:156] -> weights[3]
#   tex    [156:206] -> weights[1]
#   lights [206:233] -> weights[4]
#   cam    [233:236] -> weights[5]
_SEGMENTS = (
    (0, 100, 0),
    (100, 150, 2),
    (150, 156, 3),
    (156, 206, 1),
    (206, 233, 4),
    (233, 236, 5),
)
_CODE_DIM = 236


# ----------------------------------------------------------------------------
# Kernel: one independent partial sum per row tile.
#   partial[i] = sum_{rows in tile i, cols} coeff[c] * (x - t)^2
# Rows >= B (ragged last tile / short batch) are masked to zero; padded/garbage
# VMEM rows therefore contribute nothing.
# ----------------------------------------------------------------------------
def _code_loss_kernel(x_ref, t_ref, c_ref, o_ref, *, batch, tm, need_mask):
    x = x_ref[...].astype(jnp.float32)
    t = t_ref[...].astype(jnp.float32)
    d = x - t
    d2 = d * d                                               # (tm, D) on VPU
    if need_mask:
        rows = pl.program_id(0) * tm + lax.broadcasted_iota(
            jnp.int32, (tm, 1), 0)
        d2 = jnp.where(rows < batch, d2, 0.0)
    # Factor the per-column coefficient out of the per-element path:
    # column sums of d^2, then a single weighted lane reduce.
    col = jnp.sum(d2, axis=0, keepdims=True)                 # (1, D)
    o_ref[0] = jnp.sum(col * c_ref[...], keepdims=True)      # (1, 1)


def code_loss(infers, targets, weights, *, row_tile=1024):
    """infers, targets: (B, 236) float arrays; weights: length-6 array/list."""
    assert infers.shape == targets.shape
    B, D = infers.shape
    assert D == _CODE_DIM, f"expected {_CODE_DIM} code columns, got {D}"
    weights = jnp.asarray(weights, jnp.float32)

    # Per-column coefficient: weight / (B * segment_len).  MSELoss('mean')
    # divides by B*len, so this reproduces each component exactly.
    coeff = jnp.zeros((D,), jnp.float32)
    for s, e, wi in _SEGMENTS:
        coeff = coeff.at[s:e].set(weights[wi] / float((e - s) * B))
    coeff = coeff.reshape(1, D)

    # Row tile: large (default 1024) for HBM-roofline efficiency, multiple of
    # 8 for f32 sublane tiling.  No padding of the inputs on the host; the
    # last (possibly partial) tile is masked in-kernel.
    tm = min(row_tile, ((B + 7) // 8) * 8)
    num_tiles = pl.cdiv(B, tm)
    need_mask = (B % tm) != 0

    kernel = functools.partial(
        _code_loss_kernel, batch=B, tm=tm, need_mask=need_mask)

    partials = pl.pallas_call(
        kernel,
        out_shape=jax.ShapeDtypeStruct((num_tiles, 1, 1), jnp.float32),
        grid_spec=pltpu.PrefetchScalarGridSpec(
            num_scalar_prefetch=0,
            grid=(num_tiles,),
            in_specs=[
                pl.BlockSpec((tm, D), lambda i: (i, 0)),
                pl.BlockSpec((tm, D), lambda i: (i, 0)),
                pl.BlockSpec((1, D), lambda i: (0, 0)),
            ],
            # One (1,1,1) partial per grid step; last two block dims equal the
            # full array dims, leading dim indexes the tile.
            out_specs=pl.BlockSpec((1, 1, 1), lambda i: (i, 0, 0)),
        ),
        compiler_params=pltpu.CompilerParams(
            dimension_semantics=("parallel",)),  # independent tiles -> both v7x TCs
    )(infers, targets, coeff)

    # Tiny final reduction over per-tile partials (outside the kernel).
    return jnp.sum(partials)


# ----------------------------------------------------------------------------
# Pure-JAX reference mirroring the PyTorch module line by line.
# ----------------------------------------------------------------------------
def code_loss_ref(infers, targets, weights):
    def mse(a, b):
        return jnp.mean((a - b) ** 2)

    shape_loss = mse(infers[:, :100], targets[:, :100])
    exp_loss = mse(infers[:, 100:150], targets[:, 100:150])
    pose_loss = mse(infers[:, 150:156], targets[:, 150:156])
    tex_loss = mse(infers[:, 156:206], targets[:, 156:206])
    lights_loss = mse(infers[:, 206:233], targets[:, 206:233])
    cam_loss = mse(infers[:, 233:236], targets[:, 233:236])
    components = [shape_loss, tex_loss, exp_loss, pose_loss, lights_loss,
                  cam_loss]
    total = 0.0
    for i in range(6):
        total = total + weights[i] * components[i]
    return total


if __name__ == "__main__":
    key = jax.random.PRNGKey(0)
    k1, k2, k3, k4 = jax.random.split(key, 4)

    weights = jnp.array([1.0, 1.75, 0.8, 2.0, 1.2, 1.5], jnp.float32)

    # Small case (B=4 < tm=8 -> exercises in-kernel row masking).
    B, D = 4, _CODE_DIM
    infers = jax.random.normal(k1, (B, D), jnp.float32)
    targets = jax.random.normal(k2, (B, D), jnp.float32)

    loss = jax.jit(code_loss)(infers, targets, weights)
    loss = jax.block_until_ready(loss)
    ref = code_loss_ref(infers, targets, weights)
    assert loss.shape == ()
    assert bool(jnp.isfinite(loss))
    assert jnp.allclose(loss, ref, rtol=1e-4, atol=1e-6), (float(loss), float(ref))

    # Multi-tile case (3 row tiles, ragged last tile) -> exercises the
    # "parallel" per-tile partial-sum path and the final host-side reduce.
    B2 = 2500
    infers2 = jax.random.normal(k3, (B2, D), jnp.float32)
    targets2 = jax.random.normal(k4, (B2, D), jnp.float32)
    loss2 = jax.block_until_ready(jax.jit(code_loss)(infers2, targets2, weights))
    ref2 = code_loss_ref(infers2, targets2, weights)
    assert jnp.allclose(loss2, ref2, rtol=1e-3, atol=1e-5), (float(loss2), float(ref2))

    print("KERNEL_OK")
</pallas_src>

<mosaic_0001>
module attributes {stable_mosaic.version = 11 : i64} {
  func.func @_code_loss_kernel(%arg0: i32, %arg1: memref<8x236xf32, #tpu.memory_space<vmem>>, %arg2: memref<8x236xf32, #tpu.memory_space<vmem>>, %arg3: memref<1x236xf32, #tpu.memory_space<vmem>>, %arg4: memref<1x1x1xf32, #tpu.memory_space<vmem>>) attributes {dimension_semantics = [#tpu.dimension_semantics<parallel>], iteration_bounds = array<i64: 1>, scalar_prefetch = 0 : i64, scratch_operands = 0 : i64, tpu.core_type = #tpu.core_type<tc>, window_params = [{transform_indices = @transform_0, window_bounds = array<i64: 8, 236>}, {transform_indices = @transform_1, window_bounds = array<i64: 8, 236>}, {pipeline_mode = #tpu.pipeline_mode<synchronous>, transform_indices = @transform_2, window_bounds = array<i64: 1, 236>}, {transform_indices = @transform_3, window_bounds = array<i64: 1, 1, 1>}]} {
    %c0 = arith.constant 0 : index
    %c0_0 = arith.constant 0 : index
    %0 = vector.load %arg1[%c0, %c0_0] : memref<8x236xf32, #tpu.memory_space<vmem>>, vector<8x236xf32>
    %c0_1 = arith.constant 0 : index
    %c0_2 = arith.constant 0 : index
    %1 = vector.load %arg2[%c0_1, %c0_2] : memref<8x236xf32, #tpu.memory_space<vmem>>, vector<8x236xf32>
    %2 = arith.subf %0, %1 : vector<8x236xf32>
    %3 = arith.mulf %2, %2 : vector<8x236xf32>
    %c8_i32 = arith.constant 8 : i32
    %4 = arith.muli %arg0, %c8_i32 : i32
    %5 = tpu.iota {dimensions = array<i32: 0>} : vector<8x1xi32>
    %6 = vector.broadcast %4 : i32 to vector<8x1xi32>
    %7 = arith.addi %6, %5 : vector<8x1xi32>
    %c4_i32 = arith.constant 4 : i32
    %8 = vector.broadcast %c4_i32 : i32 to vector<8x1xi32>
    %9 = arith.cmpi slt, %7, %8 : vector<8x1xi32>
    %cst = arith.constant 0.000000e+00 : f32
    %10 = vector.shape_cast %9 : vector<8x1xi1> to vector<8x1xi1>
    %11 = vector.broadcast %10 : vector<8x1xi1> to vector<8x236xi1>
    %12 = vector.broadcast %cst : f32 to vector<8x236xf32>
    %13 = arith.select %11, %3, %12 : vector<8x236xi1>, vector<8x236xf32>
    %cst_3 = arith.constant dense<0.000000e+00> : vector<236xf32>
    %14 = vector.multi_reduction <add>, %13, %cst_3 [0] : vector<8x236xf32> to vector<236xf32>
    %15 = vector.shape_cast %14 : vector<236xf32> to vector<1x236xf32>
    %c0_4 = arith.constant 0 : index
    %c0_5 = arith.constant 0 : index
    %16 = vector.load %arg3[%c0_4, %c0_5] : memref<1x236xf32, #tpu.memory_space<vmem>>, vector<1x236xf32>
    %17 = arith.mulf %15, %16 : vector<1x236xf32>
    %18 = vector.shape_cast %17 : vector<1x236xf32> to vector<1x1x236xf32>
    %cst_6 = arith.constant dense<0.000000e+00> : vector<1xf32>
    %19 = vector.multi_reduction <add>, %18, %cst_6 [1, 2] : vector<1x1x236xf32> to vector<1xf32>
    %20 = vector.shape_cast %19 : vector<1xf32> to vector<1x1x1xf32>
    %21 = vector.extract %20[0, 0, 0] : f32 from vector<1x1x1xf32>
    %22 = vector.broadcast %21 : f32 to vector<1x1xf32>
    %c0_7 = arith.constant 0 : index
    %c0_8 = arith.constant 0 : index
    %c0_9 = arith.constant 0 : index
    %23 = vector.load %arg4[%c0_7, %c0_8, %c0_9] : memref<1x1x1xf32, #tpu.memory_space<vmem>>, vector<1x1x1xf32>
    %24 = vector.shape_cast %23 : vector<1x1x1xf32> to vector<1x1xf32>
    %25 = vector.shape_cast %22 : vector<1x1xf32> to vector<1x1x1xf32>
    tpu.vector_store %arg4[%c0_7, %c0_8, %c0_9], %25 {strides = array<i32>} : memref<1x1x1xf32, #tpu.memory_space<vmem>>, vector<1x1x1xf32>,
    return
  }
  func.func @transform_0(%arg0: i32) -> (i32, i32) {
    %c0_i32 = arith.constant 0 : i32
    %c0_i32_0 = arith.constant 0 : i32
    return %arg0, %c0_i32 : i32, i32
  }
  func.func @transform_1(%arg0: i32) -> (i32, i32) {
    %c0_i32 = arith.constant 0 : i32
    %c0_i32_0 = arith.constant 0 : i32
    return %arg0, %c0_i32 : i32, i32
  }
  func.func @transform_2(%arg0: i32) -> (i32, i32) {
    %c0_i32 = arith.constant 0 : i32
    %c0_i32_0 = arith.constant 0 : i32
    %c0_i32_1 = arith.constant 0 : i32
    return %c0_i32, %c0_i32_0 : i32, i32
  }
  func.func @transform_3(%arg0: i32) -> (i32, i32, i32) {
    %c0_i32 = arith.constant 0 : i32
    %c0_i32_0 = arith.constant 0 : i32
    %c0_i32_1 = arith.constant 0 : i32
    return %arg0, %c0_i32, %c0_i32_0 : i32, i32, i32
  }
}

</mosaic_0001>

<bundles_post_ra>
// kernel: code_loss.1
= control target key start
LH: loop header
LB: loop body
LE: loop exit
PB: predicated region body
PF: predicated region fallthrough
CT: control target
= control target key end

     0   :  { %v24_v3 = vlaneseq  ;;  %s173_s0 = inlined_call_operand.vmem [shape: f32[4,236], index: 0, kind: input, shape index: {}]   ;;  %s174_s1 = inlined_call_operand.vmem [shape: f32[4,236], index: 1, kind: input, shape index: {}]   ;;  %s175_s2 = inlined_call_operand.vmem [shape: f32[1,236], index: 2, kind: input, shape index: {}]   ;;  %s176_s3 = inlined_call_operand.hbm [shape: f32[1,1,1], index: 3, kind: output, shape index: {}]  }
   0x1   :  { %v15_v0 = vld [vmem:[%s173_s0] sm:$0xff]  ;;  %v16_v1 = vld [vmem:[%s173_s0 + $0x8] sm:$0xff] }
   0x2   :  { %v17_v2 = vld [vmem:[%s174_s1] sm:$0xff]  ;;  %v18_v4 = vld [vmem:[%s174_s1 + $0x8] sm:$0xff] }
   0x3   :  { %v19_v5 = vsub.f32 %v15_v0, %v17_v2 }
   0x4   :  { %8 = vsyncpa [#allocation3], 0  ;;  %v20_v6 = vsub.f32 %v16_v1, %v18_v4  ;;  %v25_v7 = vshrl.u32 %v24_v3, 7  ;;  %vm45_vm1 = vcmask 883712   ;;  %v53_v22 = vld [vmem:[%s175_s2] sm:$0x3] }
   0x5   :  { %v21_v8 = vmul.f32 %v19_v5, %v19_v5  ;;  %vm67_vm2 = vcmask 1040384   ;;  %vm69_vm3 = vcmask 876544   ;;  %s125_s2 = smov [#allocation2]   ;;  %vm82_vm4 = vcmask 0  }
   0x6   :  { %v22_v9 = vmul.f32 %v20_v6, %v20_v6  ;;  %vm28_vm0 = vcmp.lt.s32.totalorder %v25_v7, 4  ;;  %v57_v20 = vsub.s32 0, %v25_v7  ;;  %v61_v23 = vsub.s32 1, %v25_v7  ;;  %s90_s20 = sshll.u32 %s125_s2, 4  ;;  %s91_s20 = int_to_ptr.vmem [resolvable:$true] %s90_s20 }
   0x7   :  { %s101_s22 = scalar_lea.vmem %s91_s20, 16  ;;  %s105_s23 = scalar_lea.vmem %s91_s20, 32 }
   0x8   :  { %v33_v10 = vcombine.low %v21_v8, %v22_v9  ;;  %v34_v11 = vcombine.high %v21_v8, %v22_v9  ;;  %v58_v27 = vrot.slane %v53_v22, %v57_v20  ;;  %v62_v29 = vrot.slane %v53_v22, %v61_v23  ;;  %p102_p0 = scmp.ne.s32.totalorder %s91_s20, %s101_s22  ;;  %p106_p1 = scmp.lt.s32.totalorder %s91_s20, %s91_s20 }
   0x9   :  { %p107_p2 = scmp.lt.s32.totalorder %s105_s23, %s101_s22 }
   0xa   :  { %v37_v12 = vsel %vm28_vm0, %v33_v10, 0.0  ;;  %v38_v13 = vsel %vm28_vm0, %v34_v11, 0.0 }
   0xb   :  { %v39_v14 = vrot.slane %v37_v12, 4  ;;  %v46_v15 = vsel %vm45_vm1, %v38_v13, 0.0  ;;  %p108_p3 = por %p107_p2, %p106_p1 }
   0xc   :  { %v47_v16 = vrot.slane %v46_v15, 4 }
   0xd   :  { %v40_v17 = vadd.f32 %v39_v14, %v37_v12  ;;  %p109_p4 = pnand %p108_p3, %p102_p0 }
   0xe   :  { %v48_v18 = vadd.f32 %v47_v16, %v46_v15 }
   0xf   :  { %v41_v19 = vrot.slane %v40_v17, 2 }
  0x10   :  { %v49_v21 = vrot.slane %v48_v18, 2 }
  0x11   :  { %v42_v24 = vadd.f32 %v41_v19, %v40_v17 }
  0x12   :  { %v50_v25 = vadd.f32 %v49_v21, %v48_v18 }
  0x13   :  { %v43_v26 = vrot.slane %v42_v24, 1 }
  0x14   :  { %v51_v28 = vrot.slane %v50_v25, 1 }
  0x15   :  { %v44_v30 = vadd.f32 %v43_v26, %v42_v24 }
  0x16   :  { %v52_v31 = vadd.f32 %v51_v28, %v50_v25 }
  0x17   :  { %v65_v32 = vmul.f32 %v58_v27, %v44_v30 }
  0x18   :  { %v66_v33 = vmul.f32 %v62_v29, %v52_v31 }
  0x19   :  { %v68_v34 = vsel %vm67_vm2, %v65_v32, 0.0 }
  0x1a   :  { %v70_v35 = vsel %vm69_vm3, %v66_v33, 0.0 }
  0x1b   :  { %v71_v36 = vadd.f32 %v70_v35, %v68_v34 }
  0x1d   :  { %72 = vadd.xlane.f32.xlu0 %v71_v36 }
  0xaa   :  { %v73_v37 = vpop.xlane.xlu0 %72 }
  0xab   :  { %v74_v38 = vrot.slane %v73_v37, 4 }
  0xad   :  { %v75_v39 = vadd.f32 %v74_v38, %v73_v37 }
  0xaf   :  { %v76_v40 = vrot.slane %v75_v39, 2 }
  0xb1   :  { %v77_v41 = vadd.f32 %v76_v40, %v75_v39 }
  0xb3   :  { %v78_v42 = vrot.slane %v77_v41, 1 }
  0xb5   :  { %v79_v43 = vadd.f32 %v78_v42, %v77_v41 }
  0xb7   :  { %98 = vpush %v79_v43 }
  0xe8   :  { %s99_s21 = spop %98 }
  0xe9   :  { %v81_v44 = vstv %s99_s21 }
  0xea   :  { %83 = vst.msk [vmem:[#allocation2] sm:$0x1] %vm82_vm4, %v81_v44 }
  0xeb   :  { %112 = shalt.err (!%p109_p4)
}
  0xec   :  { %s113_s26 = scalar_lea.hbm %s176_s3, 16 }
  0xed   :  { %p114_p5 = scmp.ne.s32.totalorder %s176_s3, %s113_s26  ;;  %p117_p6 = scmp.lt.u32.totalorder %s113_s26, %s176_s3 }
  0xef   :  { %p119_p7 = pnand %p117_p6, %p114_p5 }
  0xf1   :  { %122 = shalt.err (!%p119_p7)
}
  0xf2   :  { %93 = dma.vmem_to_hbm [thread:$0]  %s91_s20, 16, %s176_s3, [#allocation3]  }
  0xf3   :  { %123 = dma.done.wait [#allocation3], 16  }
  0xf4   :  { %124 = vsyncadd [#allocation3], 4294967280 }
  0xf5   :  { %97 = vsyncpa [#allocation3], 1 }

</bundles_post_ra>
